<compile_context>
chip_gen: v7x
topology: tpu7x:2x2x1
jax: 0.10.0
libtpu: 0.0.40
codegen_flags: <defaults>
</compile_context>

<pallas_src>
import functools
import math

import jax
import jax.numpy as jnp
from jax.experimental import pallas as pl
from jax.experimental.pallas import tpu as pltpu

_INV_SQRT2 = 0.7071067811865476


def _round_up(x, m):
    return (x + m - 1) // m * m


def linear_scale_kernel(x_ref, w_ref, b_ref, dis_ref, h_ref):
    # h_scaled = (x @ W + b) * deg_src^-1/2   (bf16 MXU inputs, f32 accumulate)
    h = jnp.dot(x_ref[...], w_ref[...], preferred_element_type=jnp.float32)
    h = h + b_ref[...]
    h_ref[...] = (h * dis_ref[...]).astype(h_ref.dtype)


def aggregate_kernel(adv_ref, h_ref, disr_ref, o_ref, acc_ref, *, n_out_real):
    k = pl.program_id(1)

    @pl.when(k == 0)
    def _():
        acc_ref[...] = jnp.zeros_like(acc_ref)

    # Raw bf16 adjacency block straight into the MXU; the softmax row
    # normalization and the target-side degree scale are folded into disr.
    acc_ref[...] += jnp.dot(adv_ref[...], h_ref[...],
                            preferred_element_type=jnp.float32)

    @pl.when(k == pl.num_programs(1) - 1)
    def _():
        aggr = acc_ref[...] * disr_ref[...]          # (deg_i^-1/2 / rowsum_i)

        # update: LayerNorm(Dropout(gelu(.)));  Dropout is identity in eval.
        g = 0.5 * aggr * (1.0 + jax.lax.erf(aggr * _INV_SQRT2))  # exact-erf gelu

        # Two-pass LayerNorm over the REAL feature width; padded lanes of g are
        # exactly 0 (zero-padded W / bias), so only the centered term needs a mask.
        inv_w = 1.0 / float(n_out_real)
        lane = jax.lax.broadcasted_iota(jnp.int32, g.shape, 1)
        valid = lane < n_out_real
        mean = jnp.sum(g, axis=-1, keepdims=True) * inv_w
        c = jnp.where(valid, g - mean, 0.0)
        var = jnp.sum(c * c, axis=-1, keepdims=True) * inv_w
        y = c * jax.lax.rsqrt(var + 1e-5)            # padded lanes stay exactly 0
        o_ref[...] = y.astype(o_ref.dtype)


def gcn_layer(x_pad, w_pad, b_pad, adv_bf16, dis_src, dis_tgt, n_out, tm, tk,
              out_dtype):
    """One GCN_Layer3 on padded inputs. Returns (N_pad, n_out_pad) out_dtype."""
    N_pad, n_in_pad = x_pad.shape
    n_out_pad = w_pad.shape[1]

    # 1) per-node linear transform + source-side degree pre-scale (bf16 out)
    h_scaled = pl.pallas_call(
        linear_scale_kernel,
        out_shape=jax.ShapeDtypeStruct((N_pad, n_out_pad), jnp.bfloat16),
        grid=(N_pad // tm,),
        in_specs=[
            pl.BlockSpec((tm, n_in_pad), lambda i: (i, 0)),
            pl.BlockSpec((n_in_pad, n_out_pad), lambda i: (0, 0)),
            pl.BlockSpec((1, n_out_pad), lambda i: (0, 0)),
            pl.BlockSpec((tm, 1), lambda i: (i, 0)),
        ],
        out_specs=pl.BlockSpec((tm, n_out_pad), lambda i: (i, 0)),
        compiler_params=pltpu.CompilerParams(dimension_semantics=("parallel",)),
    )(x_pad, w_pad, b_pad, dis_src)

    # 2) K-tiled attention-normalized aggregation + gelu + LayerNorm epilogue
    out = pl.pallas_call(
        functools.partial(aggregate_kernel, n_out_real=n_out),
        out_shape=jax.ShapeDtypeStruct((N_pad, n_out_pad), out_dtype),
        grid=(N_pad // tm, N_pad // tk),
        in_specs=[
            pl.BlockSpec((tm, tk), lambda i, k: (i, k)),          # bf16 adv block
            pl.BlockSpec((tk, n_out_pad), lambda i, k: (k, 0)),   # bf16 h_scaled block
            pl.BlockSpec((tm, 1), lambda i, k: (i, 0)),           # per-target scale
        ],
        out_specs=pl.BlockSpec((tm, n_out_pad), lambda i, k: (i, 0)),
        scratch_shapes=[pltpu.VMEM((tm, n_out_pad), jnp.float32)],
        compiler_params=pltpu.CompilerParams(
            dimension_semantics=("parallel", "arbitrary")),
    )(adv_bf16, h_scaled, dis_tgt)
    return out


def gnn2_forward(layer_params, node_attr, edge_index, adv_atts, tm=128, tk=2048):
    """GNN2.forward with node_level=True (returns per-node representations)."""
    # TODO(synk): node_level=False branch calls self.out / global_mean_pool, but
    # self.out is never defined in the reference __init__, so only node_level=True
    # is implemented here.
    N = node_attr.shape[0]
    npad_tm = _round_up(max(N, tm), tm)
    tk_eff = min(tk, npad_tm)               # tk multiple of tm when capped at 2048
    N_pad = _round_up(npad_tm, tk_eff)

    row, col = edge_index[0], edge_index[1]  # row = source j, col = target i

    # Graph structure is fixed across layers -> hoisted out of the layer loop.
    deg = jnp.zeros((N,), jnp.float32).at[col].add(1.0)  # in-degree (dupes counted)
    # NOTE: zero-in-degree nodes get 0 instead of the reference's +inf, guarding the
    # dense formulation against 0*inf = NaN polluting unrelated rows.
    dinv = jnp.where(deg > 0.0, deg ** -0.5, 0.0)
    dis_src = jnp.pad(dinv, (0, N_pad - N)).reshape(N_pad, 1)

    # First-layer features: pad to 128-lane multiple, cast to bf16 (MXU-native).
    n_in0 = node_attr.shape[1]
    n_in0_pad = _round_up(n_in0, 128)
    x = jnp.zeros((N_pad, n_in0_pad), jnp.bfloat16).at[:N, :n_in0].set(
        node_attr.astype(jnp.bfloat16))

    n_layers = len(layer_params)
    n_out = None
    for li, ((w, b), adv_att) in enumerate(zip(layer_params, adv_atts)):
        n_in, n_out = w.shape
        n_in_pad = _round_up(n_in, 128)
        n_out_pad = _round_up(n_out, 128)
        wp = jnp.zeros((n_in_pad, n_out_pad), jnp.bfloat16).at[:n_in, :n_out].set(
            w.astype(jnp.bfloat16))
        bp = jnp.zeros((1, n_out_pad), jnp.float32).at[:, :n_out].set(
            b.reshape(1, -1))

        # softmax(log(a), by target) == a / rowsum_target(a)  (a > 0 on edges).
        # Precompute rowsum in O(E) and fold 1/rowsum into the target-side scale,
        # so the kernel never touches the (TM, TK) stripe except via the MXU.
        rowsum = jnp.zeros((N,), jnp.float32).at[col].add(adv_att)
        dis_t = jnp.where(rowsum > 0.0, dinv / rowsum, 0.0)
        dis_tgt = jnp.pad(dis_t, (0, N_pad - N)).reshape(N_pad, 1)

        # Densify adjacency: adv_dense[target, source]; duplicate edges sum, which is
        # exactly equivalent under att = a / rowsum(a). Streamed as bf16.
        adv_dense = (
            jnp.zeros((N_pad, N_pad), jnp.float32).at[col, row].add(adv_att)
        ).astype(jnp.bfloat16)
        # TODO(synk): for E << N^2, switch to a block-sparse adv layout with a
        # scalar-prefetched per-(TM,TK) occupancy table so empty blocks are skipped.

        out_dtype = jnp.float32 if li == n_layers - 1 else jnp.bfloat16
        x = gcn_layer(x, wp, bp, adv_dense, dis_src, dis_tgt, n_out, tm, tk_eff,
                      out_dtype)

    return x[:N, :n_out].astype(jnp.float32)


def init_params(key, n_feat, n_hids, n_out, n_layers):
    """Deterministic torch-like Linear init: U(-1/sqrt(fan_in), 1/sqrt(fan_in))."""
    n_ins = [n_feat] + n_hids
    n_outs = n_hids + [n_out]
    params = []
    for i in range(n_layers):
        key, kw, kb = jax.random.split(key, 3)
        fan_in, fan_out = n_ins[i], n_outs[i]
        bound = 1.0 / math.sqrt(fan_in)
        w = jax.random.uniform(kw, (fan_in, fan_out), jnp.float32, -bound, bound)
        b = jax.random.uniform(kb, (1, fan_out), jnp.float32, -bound, bound)
        params.append((w, b))
    return params


if __name__ == "__main__":
    key = jax.random.PRNGKey(0)

    # Small synthetic graph consistent with the module (big enough to exercise
    # the row- and K-tiled grids: N=512 with TM=128 -> 4 row tiles).
    N = 512
    n_feat = 32
    n_hids = [64]
    n_out = 8
    n_layers = 2      # len(n_hids) + 1
    n_heads = 1       # unused by GCN_Layer3

    # Bidirectional ring graph: every node has in-degree 2 (keeps deg^-0.5 finite).
    src = jnp.arange(N, dtype=jnp.int32)
    dst = (src + 1) % N
    row = jnp.concatenate([src, dst])   # sources
    col = jnp.concatenate([dst, src])   # targets
    edge_index = jnp.stack([row, col])  # (2, E), E = 2N
    E = edge_index.shape[1]

    key, k_x, k_a0, k_a1 = jax.random.split(key, 4)
    node_attr = jax.random.normal(k_x, (N, n_feat), jnp.float32)
    adv_atts = [
        jax.random.uniform(k_a0, (E,), jnp.float32, 0.5, 1.5),
        jax.random.uniform(k_a1, (E,), jnp.float32, 0.5, 1.5),
    ]

    layer_params = init_params(key, n_feat, n_hids, n_out, n_layers)

    out = gnn2_forward(layer_params, node_attr, edge_index, adv_atts)
    out = jax.block_until_ready(out)

    assert out.shape == (N, n_out), out.shape
    assert bool(jnp.all(jnp.isfinite(out)))
    print("KERNEL_OK")
</pallas_src>

<mosaic_0001>
module attributes {stable_mosaic.version = 11 : i64} {
  func.func @linear_scale_kernel(%arg0: i32, %arg1: memref<128x128xbf16, #tpu.memory_space<vmem>>, %arg2: memref<128x128xbf16, #tpu.memory_space<vmem>>, %arg3: memref<1x128xf32, #tpu.memory_space<vmem>>, %arg4: memref<128x1xf32, #tpu.memory_space<vmem>>, %arg5: memref<128x128xbf16, #tpu.memory_space<vmem>>) attributes {dimension_semantics = [#tpu.dimension_semantics<parallel>], iteration_bounds = array<i64: 4>, scalar_prefetch = 0 : i64, scratch_operands = 0 : i64, tpu.core_type = #tpu.core_type<tc>, window_params = [{transform_indices = @transform_0, window_bounds = array<i64: 128, 128>}, {pipeline_mode = #tpu.pipeline_mode<synchronous>, transform_indices = @transform_1, window_bounds = array<i64: 128, 128>}, {pipeline_mode = #tpu.pipeline_mode<synchronous>, transform_indices = @transform_2, window_bounds = array<i64: 1, 128>}, {transform_indices = @transform_3, window_bounds = array<i64: 128, 1>}, {transform_indices = @transform_4, window_bounds = array<i64: 128, 128>}]} {
    %c0 = arith.constant 0 : index
    %c0_0 = arith.constant 0 : index
    %0 = vector.load %arg1[%c0, %c0_0] : memref<128x128xbf16, #tpu.memory_space<vmem>>, vector<128x128xbf16>
    %c0_1 = arith.constant 0 : index
    %c0_2 = arith.constant 0 : index
    %1 = vector.load %arg2[%c0_1, %c0_2] : memref<128x128xbf16, #tpu.memory_space<vmem>>, vector<128x128xbf16>
    %cst = arith.constant dense<0.000000e+00> : vector<128x128xf32>
    %2 = tpu.matmul %0, %1, %cst {dimension_numbers = #tpu.dot_dimension_numbers<[1], [0], [0], [1], [0, 0, 1, 1], [], []>} : vector<128x128xbf16>, vector<128x128xbf16>, vector<128x128xf32> -> vector<128x128xf32>
    %c0_3 = arith.constant 0 : index
    %c0_4 = arith.constant 0 : index
    %3 = vector.load %arg3[%c0_3, %c0_4] : memref<1x128xf32, #tpu.memory_space<vmem>>, vector<1x128xf32>
    %4 = vector.broadcast %3 : vector<1x128xf32> to vector<128x128xf32>
    %5 = arith.addf %2, %4 : vector<128x128xf32>
    %c0_5 = arith.constant 0 : index
    %c0_6 = arith.constant 0 : index
    %6 = vector.load %arg4[%c0_5, %c0_6] : memref<128x1xf32, #tpu.memory_space<vmem>>, vector<128x1xf32>
    %7 = vector.broadcast %6 : vector<128x1xf32> to vector<128x128xf32>
    %8 = arith.mulf %5, %7 : vector<128x128xf32>
    %9 = arith.truncf %8 : vector<128x128xf32> to vector<128x128xbf16>
    %c0_7 = arith.constant 0 : index
    %c0_8 = arith.constant 0 : index
    %10 = vector.load %arg5[%c0_7, %c0_8] : memref<128x128xbf16, #tpu.memory_space<vmem>>, vector<128x128xbf16>
    tpu.vector_store %arg5[%c0_7, %c0_8], %9 {strides = array<i32>} : memref<128x128xbf16, #tpu.memory_space<vmem>>, vector<128x128xbf16>,
    return
  }
  func.func @transform_0(%arg0: i32) -> (i32, i32) {
    %c0_i32 = arith.constant 0 : i32
    %c0_i32_0 = arith.constant 0 : i32
    return %arg0, %c0_i32 : i32, i32
  }
  func.func @transform_1(%arg0: i32) -> (i32, i32) {
    %c0_i32 = arith.constant 0 : i32
    %c0_i32_0 = arith.constant 0 : i32
    %c0_i32_1 = arith.constant 0 : i32
    return %c0_i32, %c0_i32_0 : i32, i32
  }
  func.func @transform_2(%arg0: i32) -> (i32, i32) {
    %c0_i32 = arith.constant 0 : i32
    %c0_i32_0 = arith.constant 0 : i32
    %c0_i32_1 = arith.constant 0 : i32
    return %c0_i32, %c0_i32_0 : i32, i32
  }
  func.func @transform_3(%arg0: i32) -> (i32, i32) {
    %c0_i32 = arith.constant 0 : i32
    %c0_i32_0 = arith.constant 0 : i32
    return %arg0, %c0_i32 : i32, i32
  }
  func.func @transform_4(%arg0: i32) -> (i32, i32) {
    %c0_i32 = arith.constant 0 : i32
    %c0_i32_0 = arith.constant 0 : i32
    return %arg0, %c0_i32 : i32, i32
  }
}

</mosaic_0001>

<bundles_post_ra>
// kernel: tpu_custom_call.1
= control target key start
LH: loop header
LB: loop body
LE: loop exit
PB: predicated region body
PF: predicated region fallthrough
CT: control target
= control target key end

     0   :  { %9 = vsyncpa [#allocation3], 0  ;;  %s1249_s0 = inlined_call_operand.vmem [shape: bf16[512,128], index: 0, kind: input, shape index: {}]   ;;  %s1250_s1 = inlined_call_operand.vmem [shape: bf16[128,128], index: 1, kind: input, shape index: {}]   ;;  %s1251_s2 = inlined_call_operand.vmem [shape: f32[1,128], index: 2, kind: input, shape index: {}]   ;;  %s1252_s3 = inlined_call_operand.vmem [shape: f32[512,1], index: 3, kind: input, shape index: {}]   ;;  %s1253_s4 = inlined_call_operand.hbm [shape: bf16[512,128], index: 4, kind: output, shape index: {}]  }
   0x1   :  { %11 = vsyncpa [#allocation3 + $0x1], 0  ;;  %s1062_s15 = smov 0   ;;  %s1064_s16 = smov 0  }
   0x2   :  { %s1066_s17 = smov 0   ;;  %s1068_s18 = smov 0  }
   0x3 LB: > { %s1083_s19 = sadd.s32 4294967295, %s1031_s18   ;;  %s734_s20 = sadd.s32 4294967294, %s1031_s18   ;;  %s1031_s18 = sphi %s1068_s18, %s1259_s18   ;;  %s1027_s17 = sphi %s1066_s17, %s1258_s17   ;;  %s1023_s16 = sphi %s1064_s16, %s1257_s16   ;;  %s1019_s15 = sphi %s1062_s15, %s1256_s15  }
   0x4   : > { %s1087_s21 = sadd.s32 1, %s1031_s18   ;;  %s118_s22 = sadd.s32 1, %s1027_s17 }
   0x5   : > { %s115_s23 = ssub.s32 %s1031_s18, %s1087_s21  ;;  %p128_p0 = scmp.ne.s32.totalorder %s1027_s17, %s1023_s16 }
   0x6   : > { %p116_p1 = scmp.eq.s32.totalorder %s115_s23, 0  ;;  %p129_p2 = scmp.eq.s32.totalorder %s1083_s19, 3 }
   0x7   : > { %p134_p3 = scmp.ne.s32.totalorder %s1023_s16, %s1019_s15  ;;  %p135_p4 = scmp.eq.s32.totalorder %s734_s20, 3 }
   0x8   : > { %s1098_s24 = scalar_select %p116_p1, %s1027_s17, %s118_s22  }
   0x9   : > { %p1100_p5 = por %p129_p2, %p128_p0  ;;  %p1104_p6 = por %p135_p4, %p134_p3 }
   0xa   : > { %p737_p7 = scmp.ge.s32.totalorder %s1031_s18, 1  ;;  %p177_p8 = scmp.lt.s32.totalorder %s1031_s18, 5 }
   0xc   : > { %p178_p9 = pnand %p737_p7, %p177_p8 }
   0xd   : > { %v953_v0 = vld [vmem:[%s1250_s1] sm:$0xff] (!%p178_p9)   ;;  %s739_s29 = sshll.u32 (!%p178_p9), %s1083_s19, 4  ;;  %v954_v1 = vld [vmem:[%s1250_s1 + $0x8] sm:$0xff] (!%p178_p9)   ;;  %v955_v2 = vld [vmem:[%s1250_s1 + $0x10] sm:$0xff] (!%p178_p9)   ;;  %v1033_v3 = vmov (!%p178_p9), 0  }
   0xe   : > { %181 = sbr.rel (%p178_p9) target bundleno = 290 (0x122), region = 36  ;;  %p209_p10 = scmp.lt.s32.totalorder (!%p178_p9), %s739_s29, 63  ;;  %861 = vmatprep.subr.bf16.mxu0 (!%p178_p9), %v953_v0  ;;  %893 = vmatprep.subr.bf16.mxu1 (!%p178_p9), %v953_v0  ;;  %v956_v4 = vld [vmem:[%s1250_s1 + $0x18] sm:$0xff] (!%p178_p9)   ;;  %v957_v7 = vld [vmem:[%s1250_s1 + $0x20] sm:$0xff] (!%p178_p9)   ;;  %v958_v8 = vld [vmem:[%s1250_s1 + $0x28] sm:$0xff] (!%p178_p9)  }
   0xf   : > { %862 = vmatpush3.bf16.msra.mxu0 (!%p178_p9), %v953_v0  ;;  %901 = vmatpush3.bf16.msra.mxu1 (!%p178_p9), %v953_v0  ;;  %v959_v13 = vld [vmem:[%s1250_s1 + $0x30] sm:$0xff] (!%p178_p9)   ;;  %v960_v16 = vld [vmem:[%s1250_s1 + $0x38] sm:$0xff] (!%p178_p9)   ;;  %v743_v43 = vld [vmem:[%s1251_s2] ss:$0 sm:$0xff] (!%p178_p9) }
  0x10   : > { %863 = vmatprep.subr.bf16.mxu0 (!%p178_p9), %v954_v1  ;;  %894 = vmatprep.subr.bf16.mxu1 (!%p178_p9), %v954_v1 }
  0x11   : > { %952 = vset.pattern.permute.xlu1 (!%p178_p9), %v1033_v3  ;;  %951 = vset.pattern.permute.xlu0 (!%p178_p9), %v1033_v3 }
  0x13   : > { %864 = vmatpush3.bf16.msra.mxu0 (!%p178_p9), %v954_v1  ;;  %902 = vmatpush3.bf16.msra.mxu1 (!%p178_p9), %v954_v1 }
  0x14   : > { %865 = vmatprep.subr.bf16.mxu0 (!%p178_p9), %v955_v2  ;;  %895 = vmatprep.subr.bf16.mxu1 (!%p178_p9), %v955_v2 }
  0x15   : > { %s1261_s29 = smov (!%p209_p10, %s739_s29), 63 }
  0x16   : > { %s740_s8 = sshll.u32 %s1261_s29, 2  ;;  %s742_s14 = sshll.u32 %s1261_s29, 3 }
  0x17   : > { %s1123_s11 = scalar_lea.vmem %s1249_s0, %s740_s8  ;;  %866 = vmatpush3.bf16.msra.mxu0 %v955_v2  ;;  %903 = vmatpush3.bf16.msra.mxu1 %v955_v2  ;;  %s1136_s28 = scalar_lea.vmem %s1252_s3, %s742_s14 }
  0x18   : > { %v961_v5 = vld [vmem:[%s1123_s11] sm:$0xff]   ;;  %867 = vmatprep.subr.bf16.mxu0 %v956_v4  ;;  %896 = vmatprep.subr.bf16.mxu1 %v956_v4  ;;  %v456_v9 = vld [vmem:[%s1136_s28 + $0x10] sm:$0xff]  ;;  %v457_v11 = vld [vmem:[%s1136_s28 + $0x18] sm:$0xff]  ;;  %s797_s14 = sshll.u32 %s1083_s19, 10  ;;  %s1034_s29 = smov [#allocation2]  }
  0x19   : > { %v962_v6 = vld [vmem:[%s1123_s11 + $0x20] sm:$0xff]   ;;  %877 = vmatprep.mubr.bf16.mxu0 %v961_v5  ;;  %482 = vperm.xlu1 %952, %v456_v9   ;;  %v455_v12 = vld [vmem:[%s1136_s28 + $0x8] sm:$0xff]  ;;  %v461_v17 = vld [vmem:[%s1136_s28 + $0x38] sm:$0xff]  ;;  %s1198_s23 = scalar_lea.hbm %s1253_s4, %s797_s14  ;;  %s973_s30 = sshll.u32 %s1034_s29, 4  ;;  %s974_s30 = int_to_ptr.vmem [resolvable:$false] %s973_s30 }
  0x1a   : > { %885 = vmatprep.mubr.bf16.mxu1 %v962_v6  ;;  %v454_v10 = vld [vmem:[%s1136_s28] sm:$0xff]  ;;  %v459_v14 = vld [vmem:[%s1136_s28 + $0x28] sm:$0xff]  ;;  %v460_v18 = vld [vmem:[%s1136_s28 + $0x30] sm:$0xff]  ;;  %s975_s5 = scalar_lea.vmem %s974_s30, 2048 }
  0x1b   : > { %868 = vmatpush3.bf16.msra.mxu0 %v956_v4  ;;  %904 = vmatpush3.bf16.msra.mxu1 %v956_v4  ;;  %v458_v15 = vld [vmem:[%s1136_s28 + $0x20] sm:$0xff]  ;;  %v963_v19 = vld [vmem:[%s1123_s11 + $0x8] sm:$0xff]   ;;  %v965_v23 = vld [vmem:[%s1123_s11 + $0x10] sm:$0xff]  }
  0x1c   : > { %869 = vmatprep.subr.bf16.mxu0 %v957_v7  ;;  %897 = vmatprep.subr.bf16.mxu1 %v957_v7  ;;  %v964_v20 = vld [vmem:[%s1123_s11 + $0x28] sm:$0xff]   ;;  %v462_v22 = vld [vmem:[%s1136_s28 + $0x40] sm:$0xff]  ;;  %v966_v24 = vld [vmem:[%s1123_s11 + $0x30] sm:$0xff]  }
  0x1d   : > { %472 = vperm.xlu0 %951, %v454_v10   ;;  %487 = vperm.xlu1 %952, %v457_v11   ;;  %v463_v21 = vld [vmem:[%s1136_s28 + $0x48] sm:$0xff]  ;;  %v465_v25 = vld [vmem:[%s1136_s28 + $0x58] sm:$0xff]  ;;  %v464_v26 = vld [vmem:[%s1136_s28 + $0x50] sm:$0xff] }
  0x1e   : > { %v967_v27 = vld [vmem:[%s1123_s11 + $0x18] sm:$0xff]   ;;  %v467_v29 = vld [vmem:[%s1136_s28 + $0x68] sm:$0xff]  ;;  %v466_v30 = vld [vmem:[%s1136_s28 + $0x60] sm:$0xff] }
  0x1f   : > { %870 = vmatpush3.bf16.msra.mxu0 %v957_v7  ;;  %905 = vmatpush3.bf16.msra.mxu1 %v957_v7  ;;  %v968_v28 = vld [vmem:[%s1123_s11 + $0x38] sm:$0xff]   ;;  %v468_v32 = vld [vmem:[%s1136_s28 + $0x70] sm:$0xff]  ;;  %s205_s11 = sand.u32 1, %s1023_s16  }
  0x20   : > { %871 = vmatprep.subr.bf16.mxu0 %v958_v8  ;;  %898 = vmatprep.subr.bf16.mxu1 %v958_v8  ;;  %v469_v31 = vld [vmem:[%s1136_s28 + $0x78] sm:$0xff]  ;;  %s738_s12 = sshll.u32 %s205_s11, 6  ;;  %s1208_s27 = scalar_lea.sflag [#allocation3], %s205_s11 }
  0x21   : > { %477 = vperm.xlu0 %951, %v455_v12   ;;  %497 = vperm.xlu1 %952, %v459_v14   ;;  %s1183_s13 = scalar_lea.vmem [#allocation2], %s738_s12 }
  0x22   : > { %s660_s20 = sshll.u32 %s1183_s13, 4  ;;  %s1200_s20 = int_to_ptr.vmem [resolvable:$true] %s660_s20 }
  0x23   : > { %872 = vmatpush3.bf16.msra.mxu0 %v958_v8  ;;  %906 = vmatpush3.bf16.msra.mxu1 %v958_v8  ;;  %s969_s28 = scalar_lea.vmem %s1200_s20, 1024  ;;  %p976_p0 = scmp.lt.s32.totalorder %s1200_s20, %s974_s30 }
  0x24   : > { %873 = vmatprep.subr.bf16.mxu0 %v959_v13  ;;  %899 = vmatprep.subr.bf16.mxu1 %v959_v13  ;;  %p970_p11 = scmp.ne.s32.totalorder %s1200_s20, %s969_s28  ;;  %p977_p1 = scmp.lt.s32.totalorder %s975_s5, %s969_s28 }
  0x25   : > { %492 = vperm.xlu0 %951, %v458_v15   ;;  %507 = vperm.xlu1 %952, %v461_v17  }
  0x26   : > { %p971_p12 = pnand %p970_p11, %p1100_p5  ;;  %p978_p2 = por %p977_p1, %p976_p0 }
  0x27   : > { %874 = vmatpush3.bf16.msra.mxu0 %v959_v13  ;;  %907 = vmatpush3.bf16.msra.mxu1 %v959_v13 }
  0x28   : > { %875 = vmatprep.subr.bf16.mxu0 %v960_v16  ;;  %900 = vmatprep.subr.bf16.mxu1 %v960_v16  ;;  %p972_p13 = pneg %p971_p12 }
  0x29   : > { %502 = vperm.xlu0 %951, %v460_v18   ;;  %517 = vperm.xlu1 %952, %v463_v21  }
  0x2a   : > { %p979_p3 = pnand %p978_p2, %p972_p13 }
  0x2b   : > { %876 = vmatpush3.bf16.msra.mxu0 %v960_v16  ;;  %908 = vmatpush3.bf16.msra.mxu1 %v960_v16 }
  0x2d   : > { %512 = vperm.xlu0 %951, %v462_v22   ;;  %527 = vperm.xlu1 %952, %v465_v25  }
  0x2e   : > { %878 = vmatmul.mubr.bf16.vlgmr.msra.gmra.mrb[0].mxu0 %v963_v19  ;;  %886 = vmatmul.mubr.bf16.vlgmr.msra.gmra.mrb[0].mxu1 %v964_v20 }
  0x2f   : > { %881 = vmatprep.mubr.bf16.mxu0 %v965_v23  ;;  %889 = vmatprep.mubr.bf16.mxu1 %v966_v24 }
  0x31   : > { %522 = vperm.xlu0 %951, %v464_v26   ;;  %537 = vperm.xlu1 %952, %v467_v29  }
  0x35   : > { %532 = vperm.xlu0 %951, %v466_v30   ;;  %547 = vperm.xlu1 %952, %v469_v31  }
  0x36   : > { %882 = vmatmul.mubr.bf16.gmra.mrb[4].mxu0 %v967_v27  ;;  %890 = vmatmul.mubr.bf16.gmra.mrb[4].mxu1 %v968_v28 }
  0x39   : > { %542 = vperm.xlu0 %951, %v468_v32  }
  0x98   : > { %v483_v33 = vpop.permute.xlu1 %482 }
  0x9c   : > { %v473_v34 = vpop.permute.xlu0 %472  ;;  %v488_v35 = vpop.permute.xlu1 %487 }
  0xa0   : > { %v478_v36 = vpop.permute.xlu0 %477  ;;  %v1169_v37 = vpop.permute.xlu1 %497 }
  0xa4   : > { %v1171_v38 = vpop.permute.xlu0 %492  ;;  %v1173_v39 = vpop.permute.xlu1 %507 }
  0xa8   : > { %v1175_v40 = vpop.permute.xlu0 %502  ;;  %v518_v41 = vpop.permute.xlu1 %517 }
  0xac   : > { %v513_v42 = vpop.permute.xlu0 %512  ;;  %v528_v44 = vpop.permute.xlu1 %527 }
  0xb0   : > { %v523_v45 = vpop.permute.xlu0 %522  ;;  %v538_v2 = vpop.permute.xlu1 %537 }
  0xb4   : > { %v533_v3 = vpop.permute.xlu0 %532  ;;  %v548_v26 = vpop.permute.xlu1 %547 }
  0xb8   : > { %v543_v27 = vpop.permute.xlu0 %542 }
 0x101   : > { %v879_v46 = vpop.f32.mrb[0].mxu0  ;;  %v887_v47 = vpop.f32.mrb[0].mxu1 }
 0x102   : > { %v400_v48 = vadd.f32 %v879_v46, %v743_v43  ;;  %v432_v49 = vadd.f32 %v887_v47, %v743_v43  ;;  %v391_v50 = vpop.f32.mrb[1].mxu0  ;;  %v423_v51 = vpop.f32.mrb[1].mxu1 }
 0x103   : > { %v392_v52 = vadd.f32 %v743_v43, %v391_v50  ;;  %v424_v53 = vadd.f32 %v743_v43, %v423_v51  ;;  %v880_v54 = vpop.f32.mrb[2].mxu0  ;;  %v888_v55 = vpop.f32.mrb[2].mxu1 }
 0x104   : > { %v403_v56 = vadd.f32 %v880_v54, %v743_v43  ;;  %v435_v57 = vadd.f32 %v888_v55, %v743_v43  ;;  %v394_v58 = vpop.f32.mrb[3].mxu0  ;;  %v426_v59 = vpop.f32.mrb[3].mxu1  ;;  %v552_v62 = vmul.f32 %v483_v33, %v400_v48  ;;  %v560_v63 = vmul.f32 %v523_v45, %v432_v49 }
 0x105   : > { %v395_v60 = vadd.f32 %v743_v43, %v394_v58  ;;  %v427_v61 = vadd.f32 %v743_v43, %v426_v59  ;;  %v550_v4 = vmul.f32 %v473_v34, %v392_v52  ;;  %v558_v5 = vmul.f32 %v513_v42, %v424_v53 }
 0x106   : > { %v553_v0 = vmul.f32 %v488_v35, %v403_v56  ;;  %v561_v1 = vmul.f32 %v528_v44, %v435_v57 }
 0x107   : > { %v551_v6 = vmul.f32 %v478_v36, %v395_v60  ;;  %v559_v7 = vmul.f32 %v518_v41, %v427_v61 }
 0x108   : > { %v806_v8 = vpack.c.bf16 %v553_v0, %v552_v62  ;;  %v826_v9 = vpack.c.bf16 %v561_v1, %v560_v63 }
 0x109   : > { %v801_v10 = vpack.c.bf16 %v551_v6, %v550_v4  ;;  %v821_v11 = vpack.c.bf16 %v559_v7, %v558_v5  ;;  %v883_v12 = vpop.f32.mrb[4].mxu0  ;;  %v891_v13 = vpop.f32.mrb[4].mxu1 }
 0x10a   : > { %838 = vst [vmem:[%s1183_s13 + $0x8] sm:$0xff] %v806_v8   ;;  %842 = vst [vmem:[%s1183_s13 + $0x28] sm:$0xff] %v826_v9   ;;  %v416_v14 = vadd.f32 %v883_v12, %v743_v43  ;;  %v448_v15 = vadd.f32 %v891_v13, %v743_v43  ;;  %v407_v16 = vpop.f32.mrb[5].mxu0  ;;  %v439_v17 = vpop.f32.mrb[5].mxu1 }
 0x10b   : > { %802 = vst [vmem:[%s1183_s13] sm:$0xff] %v801_v10   ;;  %841 = vst [vmem:[%s1183_s13 + $0x20] sm:$0xff] %v821_v11   ;;  %v408_v18 = vadd.f32 %v743_v43, %v407_v16  ;;  %v440_v19 = vadd.f32 %v743_v43, %v439_v17  ;;  %v884_v20 = vpop.f32.mrb[6].mxu0  ;;  %v892_v21 = vpop.f32.mrb[6].mxu1 }
 0x10c   : > { %v419_v22 = vadd.f32 %v884_v20, %v743_v43  ;;  %v451_v23 = vadd.f32 %v892_v21, %v743_v43  ;;  %v410_v24 = vpop.f32.mrb[7].mxu0  ;;  %v442_v25 = vpop.f32.mrb[7].mxu1  ;;  %v556_v30 = vmul.f32 %v1175_v40, %v416_v14  ;;  %v564_v31 = vmul.f32 %v543_v27, %v448_v15 }
 0x10d   : > { %v411_v28 = vadd.f32 %v743_v43, %v410_v24  ;;  %v443_v29 = vadd.f32 %v743_v43, %v442_v25  ;;  %v554_v34 = vmul.f32 %v1171_v38, %v408_v18  ;;  %v562_v35 = vmul.f32 %v533_v3, %v440_v19 }
 0x10e   : > { %v557_v32 = vmul.f32 %v1173_v39, %v419_v22  ;;  %v565_v33 = vmul.f32 %v548_v26, %v451_v23 }
 0x10f   : > { %v555_v36 = vmul.f32 %v1169_v37, %v411_v28  ;;  %v563_v41 = vmul.f32 %v538_v2, %v443_v29 }
 0x110   : > { %v816_v42 = vpack.c.bf16 %v557_v32, %v556_v30  ;;  %v836_v43 = vpack.c.bf16 %v565_v33, %v564_v31 }
 0x111   : > { %v811_v39 = vpack.c.bf16 %v555_v36, %v554_v34  ;;  %v831_v40 = vpack.c.bf16 %v563_v41, %v562_v35 }
 0x112   : > { %840 = vst [vmem:[%s1183_s13 + $0x18] sm:$0xff] %v816_v42   ;;  %844 = vst [vmem:[%s1183_s13 + $0x38] sm:$0xff] %v836_v43  }
 0x113   : > { %839 = vst [vmem:[%s1183_s13 + $0x10] sm:$0xff] %v811_v39   ;;  %843 = vst [vmem:[%s1183_s13 + $0x30] sm:$0xff] %v831_v40  }
 0x114   : > { %982 = shalt.err (!%p979_p3)
}
 0x115   : > { %s983_s6 = scalar_lea.hbm %s1198_s23, 1024  ;;  %s987_s9 = scalar_lea.hbm %s1253_s4, 4096 }
 0x116   : > { %p984_p4 = scmp.ne.s32.totalorder %s1198_s23, %s983_s6  ;;  %p988_p9 = scmp.lt.u32.totalorder %s1198_s23, %s1253_s4 }
 0x117   : > { %p989_p10 = scmp.lt.u32.totalorder %s987_s9, %s983_s6  ;;  %p991_p12 = scmp.lt.u32.totalorder %s983_s6, %s1198_s23 }
 0x118   : > { %p985_p7 = pnand %p984_p4, %p1100_p5 }
 0x119   : > { %p990_p11 = por %p989_p10, %p988_p9 }
 0x11a   : > { %p986_p8 = pneg %p985_p7 }
 0x11b   : > { %p992_p13 = por %p991_p12, %p990_p11 }
 0x11d   : > { %p993_p0 = pnand %p992_p13, %p986_p8 }
 0x11f   : > { %996 = shalt.err (!%p993_p0)
}
 0x120   : > { %s1035_s12 = smov 64   ;;  %s1036_s13 = smov 4  }
 0x121   : > { %909 = dma.vmem_to_hbm [thread:$0]  (%p1100_p5), %s1200_s20, 1024, %s1198_s23, %s1208_s27, %s1035_s12, %s1035_s12, %s1036_s13  }
 0x122 PF: > { %p915_p1 = scmp.ge.s32.totalorder %s1031_s18, 2  ;;  %s675_s14 = sand.u32 1, %s1019_s15  }
 0x123   : > { %s676_s19 = scalar_lea.sflag [#allocation3], %s675_s14 }
 0x124   : > { %p912_p2 = pnand %p915_p1, %p1104_p6 }
 0x126   : > { %1014 = dma.done.wait (!%p912_p2), %s676_s19, 1024  }
 0x127   : > { %1016 = vsyncadd (!%p912_p2), %s676_s19, 4294966272  ;;  %p14_p3 = scmp.ge.s32.totalorder %s1087_s21, 6   ;;  %s1256_s15 = smov %s1023_s16 }
 0x128   : > { %s1257_s16 = smov %s1027_s17  ;;  %s1258_s17 = smov %s1098_s24 }
 0x129   : > { %s1259_s18 = smov %s1087_s21  ;;  %16 = sbr.rel (!%p14_p3) target bundleno = 3 (0x3), region = 74 }
 0x130   :  { %681 = vsyncpa [#allocation3], 1 }
 0x131   :  { %683 = vsyncpa [#allocation3 + $0x1], 1 }

</bundles_post_ra>
